<compile_context>
chip_gen: v7x
topology: tpu7x:2x2x1
jax: 0.10.0
libtpu: 0.0.40
codegen_flags: <defaults>
</compile_context>

<pallas_src>
import functools

import jax
import jax.numpy as jnp
from jax import lax
from jax.experimental import pallas as pl
from jax.experimental.pallas import tpu as pltpu


def _dice_partial_kernel(*refs, tile_rows, steps_per_core, valid_rows,
                         has_weights, needs_mask):
    if has_weights:
        p_ref, g_ref, m_ref, w_ref, inter_ref, union_ref = refs
    else:
        p_ref, g_ref, m_ref, inter_ref, union_ref = refs
        w_ref = None

    c = pl.program_id(0)   # core split   ("parallel")
    j = pl.program_id(1)   # row blocks   ("arbitrary", sequential per core)

    # Each core owns its own (8, lanes) output block -> init once per core.
    @pl.when(j == 0)
    def _():
        inter_ref[...] = jnp.zeros_like(inter_ref)
        union_ref[...] = jnp.zeros_like(union_ref)

    p = p_ref[...].astype(jnp.float32)
    g = g_ref[...].astype(jnp.float32)
    m = m_ref[...].astype(jnp.float32)
    if w_ref is not None:
        m = m * w_ref[...].astype(jnp.float32)

    inter_c = p * g * m        # pred * gt * mask
    union_c = (p + g) * m      # pred * mask + gt * mask, fused

    if needs_mask:
        # Mask rows whose *logical* global index is past the real row count
        # (covers both the partial edge block and fully clamped overflow
        # blocks); jnp.where keeps any garbage/NaN tail from poisoning sums.
        row0 = (c * steps_per_core + j) * tile_rows
        rid = row0 + lax.broadcasted_iota(jnp.int32, (tile_rows, 1), 0)
        valid = rid < valid_rows
        inter_c = jnp.where(valid, inter_c, 0.0)
        union_c = jnp.where(valid, union_c, 0.0)

    # Sublane-only reduction per tile; cross-lane reduce happens once in the
    # wrapper.  The resident output block is the accumulator.
    inter_ref[0:1, :] += jnp.sum(inter_c, axis=0, keepdims=True)
    union_ref[0:1, :] += jnp.sum(union_c, axis=0, keepdims=True)


def dice_loss(pred, gt, mask, weights=None, eps=1e-6, *,
              target_block_bytes=2 * 1024 * 1024, num_core_splits=2):
    """Pallas implementation of DiceLoss.forward."""
    if pred.ndim == 4:
        pred = pred[:, 0, :, :]
        gt = gt[:, 0, :, :]
    assert pred.shape == gt.shape
    assert pred.shape == mask.shape
    has_weights = weights is not None
    if has_weights:
        assert weights.shape == mask.shape

    n, h, w = pred.shape
    total = n * h * w

    # Lane-dense 2-D view: lanes = largest multiple of 128 (<=1024) dividing
    # the element count.  Fallback keeps the (N*H, W) layout (no padding pass).
    lanes = None
    for k in range(8, 0, -1):
        if total % (128 * k) == 0:
            lanes = 128 * k
            break
    if lanes is None:
        lanes = w
        rows = n * h
    else:
        rows = total // lanes

    inputs = [pred.reshape(rows, lanes),
              gt.reshape(rows, lanes),
              mask.reshape(rows, lanes)]
    if has_weights:
        inputs.append(weights.reshape(rows, lanes))

    # Tile sizing: ~target_block_bytes per input block (double-buffered by the
    # pipeline), sublane-aligned for the narrowest dtype present.
    max_itemsize = max(x.dtype.itemsize for x in inputs)
    min_itemsize = min(x.dtype.itemsize for x in inputs)
    sublane_mult = {4: 8, 2: 16, 1: 32}.get(min_itemsize, 32)
    tr = target_block_bytes // (lanes * max_itemsize)
    tr = max(sublane_mult, (tr // sublane_mult) * sublane_mult)
    tile_rows = min(rows, tr)   # == rows (full dim) for small inputs

    total_steps = pl.cdiv(rows, tile_rows)
    ncs = max(1, min(num_core_splits, total_steps))
    steps_per_core = pl.cdiv(total_steps, ncs)
    needs_mask = (ncs * steps_per_core * tile_rows) != rows
    last_block = total_steps - 1

    def in_index_map(c, j):
        # Clamp so physical reads never start past the array; logical-index
        # masking inside the kernel zeroes any duplicated/overflow block.
        return (jnp.minimum(c * steps_per_core + j, last_block), 0)

    in_block = pl.BlockSpec((tile_rows, lanes), in_index_map)
    out_block = pl.BlockSpec((8, lanes), lambda c, j: (c, 0))
    out_shape = (jax.ShapeDtypeStruct((ncs * 8, lanes), jnp.float32),
                 jax.ShapeDtypeStruct((ncs * 8, lanes), jnp.float32))

    kernel = functools.partial(
        _dice_partial_kernel,
        tile_rows=tile_rows,
        steps_per_core=steps_per_core,
        valid_rows=rows,
        has_weights=has_weights,
        needs_mask=needs_mask,
    )

    inter_parts, union_parts = pl.pallas_call(
        kernel,
        out_shape=out_shape,
        grid_spec=pltpu.PrefetchScalarGridSpec(
            num_scalar_prefetch=0,
            grid=(ncs, steps_per_core),
            in_specs=[in_block] * len(inputs),
            out_specs=[out_block, out_block],
        ),
        compiler_params=pltpu.CompilerParams(
            dimension_semantics=("parallel", "arbitrary"),
            vmem_limit_bytes=32 * 1024 * 1024,
        ),
    )(*inputs)

    # Final cheap scalar glue (cross-lane reduce + loss arithmetic).
    intersection = jnp.sum(inter_parts)
    union = jnp.sum(union_parts) + jnp.float32(eps)
    return 1.0 - 2.0 * intersection / union


def _dice_loss_ref(pred, gt, mask, weights=None, eps=1e-6):
    """Pure-JAX reference mirroring the PyTorch module exactly."""
    if pred.ndim == 4:
        pred = pred[:, 0, :, :]
        gt = gt[:, 0, :, :]
    if weights is not None:
        mask = weights * mask
    intersection = jnp.sum(pred * gt * mask)
    union = jnp.sum(pred * mask) + jnp.sum(gt * mask) + eps
    return 1.0 - 2.0 * intersection / union


if __name__ == "__main__":
    key = jax.random.PRNGKey(0)
    k1, k2, k3, k4 = jax.random.split(key, 4)

    N, C, H, W = 2, 1, 16, 16
    pred = jax.nn.sigmoid(jax.random.normal(k1, (N, C, H, W), jnp.float32))
    gt = (jax.random.uniform(k2, (N, C, H, W)) > 0.5).astype(jnp.float32)
    mask = (jax.random.uniform(k3, (N, H, W)) > 0.1).astype(jnp.float32)
    weights = jax.random.uniform(k4, (N, H, W), jnp.float32)

    # without weights
    loss = jax.block_until_ready(dice_loss(pred, gt, mask))
    loss_ref = _dice_loss_ref(pred, gt, mask)
    assert abs(float(loss) - float(loss_ref)) < 1e-5, (loss, loss_ref)
    assert float(loss) <= 1.0

    # with weights (folded into the kernel as a 4th input)
    loss_w = jax.block_until_ready(dice_loss(pred, gt, mask, weights))
    loss_w_ref = _dice_loss_ref(pred, gt, mask, weights)
    assert abs(float(loss_w) - float(loss_w_ref)) < 1e-5, (loss_w, loss_w_ref)
    assert float(loss_w) <= 1.0

    # slightly larger case that exercises multi-step grid, the 2-way core
    # split and the remainder-row masking path (small block size forces it).
    k5, k6, k7 = jax.random.split(k4, 3)
    N2, H2, W2 = 5, 64, 128
    pred2 = jax.nn.sigmoid(jax.random.normal(k5, (N2, 1, H2, W2), jnp.float32))
    gt2 = (jax.random.uniform(k6, (N2, 1, H2, W2)) > 0.5).astype(jnp.float32)
    mask2 = (jax.random.uniform(k7, (N2, H2, W2)) > 0.1).astype(jnp.float32)
    loss2 = jax.block_until_ready(
        dice_loss(pred2, gt2, mask2, target_block_bytes=40 * 1024))
    loss2_ref = _dice_loss_ref(pred2, gt2, mask2)
    assert abs(float(loss2) - float(loss2_ref)) < 1e-5, (loss2, loss2_ref)
    assert float(loss2) <= 1.0

    print("KERNEL_OK")
</pallas_src>

<mosaic_0001>
module attributes {stable_mosaic.version = 11 : i64} {
  func.func @_dice_partial_kernel(%arg0: i32, %arg1: i32, %arg2: memref<1x512xf32, #tpu.memory_space<vmem>>, %arg3: memref<1x512xf32, #tpu.memory_space<vmem>>, %arg4: memref<1x512xf32, #tpu.memory_space<vmem>>, %arg5: memref<8x512xf32, #tpu.memory_space<vmem>>, %arg6: memref<8x512xf32, #tpu.memory_space<vmem>>) attributes {dimension_semantics = [#tpu.dimension_semantics<parallel>, #tpu.dimension_semantics<arbitrary>], iteration_bounds = array<i64: 1, 1>, scalar_prefetch = 0 : i64, scratch_operands = 0 : i64, tpu.core_type = #tpu.core_type<tc>, window_params = [{transform_indices = @transform_0, window_bounds = array<i64: 1, 512>}, {transform_indices = @transform_1, window_bounds = array<i64: 1, 512>}, {transform_indices = @transform_2, window_bounds = array<i64: 1, 512>}, {transform_indices = @transform_3, window_bounds = array<i64: 8, 512>}, {transform_indices = @transform_4, window_bounds = array<i64: 8, 512>}]} {
    %c0_i32 = arith.constant 0 : i32
    %0 = arith.cmpi eq, %arg1, %c0_i32 : i32
    %1 = arith.extui %0 : i1 to i32
    %c0_i32_0 = arith.constant 0 : i32
    %2 = arith.cmpi ne, %1, %c0_i32_0 : i32
    scf.if %2 {
      %cst_15 = arith.constant 0.000000e+00 : f32
      %20 = vector.broadcast %cst_15 : f32 to vector<8x512xf32>
      %c0_16 = arith.constant 0 : index
      %c0_17 = arith.constant 0 : index
      %21 = vector.load %arg5[%c0_16, %c0_17] : memref<8x512xf32, #tpu.memory_space<vmem>>, vector<8x512xf32>
      tpu.vector_store %arg5[%c0_16, %c0_17], %20 {strides = array<i32>} : memref<8x512xf32, #tpu.memory_space<vmem>>, vector<8x512xf32>,
      %cst_18 = arith.constant 0.000000e+00 : f32
      %22 = vector.broadcast %cst_18 : f32 to vector<8x512xf32>
      %c0_19 = arith.constant 0 : index
      %c0_20 = arith.constant 0 : index
      %23 = vector.load %arg6[%c0_19, %c0_20] : memref<8x512xf32, #tpu.memory_space<vmem>>, vector<8x512xf32>
      tpu.vector_store %arg6[%c0_19, %c0_20], %22 {strides = array<i32>} : memref<8x512xf32, #tpu.memory_space<vmem>>, vector<8x512xf32>,
    } else {
    }
    %c0 = arith.constant 0 : index
    %c0_1 = arith.constant 0 : index
    %3 = vector.load %arg2[%c0, %c0_1] : memref<1x512xf32, #tpu.memory_space<vmem>>, vector<1x512xf32>
    %c0_2 = arith.constant 0 : index
    %c0_3 = arith.constant 0 : index
    %4 = vector.load %arg3[%c0_2, %c0_3] : memref<1x512xf32, #tpu.memory_space<vmem>>, vector<1x512xf32>
    %c0_4 = arith.constant 0 : index
    %c0_5 = arith.constant 0 : index
    %5 = vector.load %arg4[%c0_4, %c0_5] : memref<1x512xf32, #tpu.memory_space<vmem>>, vector<1x512xf32>
    %6 = arith.mulf %3, %4 : vector<1x512xf32>
    %7 = arith.mulf %6, %5 : vector<1x512xf32>
    %8 = arith.addf %3, %4 : vector<1x512xf32>
    %9 = arith.mulf %8, %5 : vector<1x512xf32>
    %c0_6 = arith.constant 0 : index
    %c0_7 = arith.constant 0 : index
    %10 = vector.load %arg5[%c0_6, %c0_7] : memref<8x512xf32, #tpu.memory_space<vmem>>, vector<1x512xf32>
    %cst = arith.constant dense<0.000000e+00> : vector<512xf32>
    %11 = vector.multi_reduction <add>, %7, %cst [0] : vector<1x512xf32> to vector<512xf32>
    %12 = vector.shape_cast %11 : vector<512xf32> to vector<1x512xf32>
    %13 = arith.addf %10, %12 : vector<1x512xf32>
    %c0_8 = arith.constant 0 : index
    %c0_9 = arith.constant 0 : index
    %14 = vector.load %arg5[%c0_8, %c0_9] : memref<8x512xf32, #tpu.memory_space<vmem>>, vector<1x512xf32>
    tpu.vector_store %arg5[%c0_8, %c0_9], %13 {strides = array<i32>} : memref<8x512xf32, #tpu.memory_space<vmem>>, vector<1x512xf32>,
    %c0_10 = arith.constant 0 : index
    %c0_11 = arith.constant 0 : index
    %15 = vector.load %arg6[%c0_10, %c0_11] : memref<8x512xf32, #tpu.memory_space<vmem>>, vector<1x512xf32>
    %cst_12 = arith.constant dense<0.000000e+00> : vector<512xf32>
    %16 = vector.multi_reduction <add>, %9, %cst_12 [0] : vector<1x512xf32> to vector<512xf32>
    %17 = vector.shape_cast %16 : vector<512xf32> to vector<1x512xf32>
    %18 = arith.addf %15, %17 : vector<1x512xf32>
    %c0_13 = arith.constant 0 : index
    %c0_14 = arith.constant 0 : index
    %19 = vector.load %arg6[%c0_13, %c0_14] : memref<8x512xf32, #tpu.memory_space<vmem>>, vector<1x512xf32>
    tpu.vector_store %arg6[%c0_13, %c0_14], %18 {strides = array<i32>} : memref<8x512xf32, #tpu.memory_space<vmem>>, vector<1x512xf32>,
    return
  }
  func.func @transform_0(%arg0: i32, %arg1: i32) -> (i32, i32) {
    %c1_i32 = arith.constant 1 : i32
    %0 = arith.muli %arg0, %c1_i32 : i32
    %1 = arith.addi %0, %arg1 : i32
    %c0_i32 = arith.constant 0 : i32
    %2 = arith.minsi %1, %c0_i32 : i32
    %c0_i32_0 = arith.constant 0 : i32
    %c0_i32_1 = arith.constant 0 : i32
    return %2, %c0_i32_0 : i32, i32
  }
  func.func @transform_1(%arg0: i32, %arg1: i32) -> (i32, i32) {
    %c1_i32 = arith.constant 1 : i32
    %0 = arith.muli %arg0, %c1_i32 : i32
    %1 = arith.addi %0, %arg1 : i32
    %c0_i32 = arith.constant 0 : i32
    %2 = arith.minsi %1, %c0_i32 : i32
    %c0_i32_0 = arith.constant 0 : i32
    %c0_i32_1 = arith.constant 0 : i32
    return %2, %c0_i32_0 : i32, i32
  }
  func.func @transform_2(%arg0: i32, %arg1: i32) -> (i32, i32) {
    %c1_i32 = arith.constant 1 : i32
    %0 = arith.muli %arg0, %c1_i32 : i32
    %1 = arith.addi %0, %arg1 : i32
    %c0_i32 = arith.constant 0 : i32
    %2 = arith.minsi %1, %c0_i32 : i32
    %c0_i32_0 = arith.constant 0 : i32
    %c0_i32_1 = arith.constant 0 : i32
    return %2, %c0_i32_0 : i32, i32
  }
  func.func @transform_3(%arg0: i32, %arg1: i32) -> (i32, i32) {
    %c0_i32 = arith.constant 0 : i32
    %c0_i32_0 = arith.constant 0 : i32
    return %arg0, %c0_i32 : i32, i32
  }
  func.func @transform_4(%arg0: i32, %arg1: i32) -> (i32, i32) {
    %c0_i32 = arith.constant 0 : i32
    %c0_i32_0 = arith.constant 0 : i32
    return %arg0, %c0_i32 : i32, i32
  }
}

</mosaic_0001>

<bundles_post_ra>
// kernel: tpu_custom_call.1
= control target key start
LH: loop header
LB: loop body
LE: loop exit
PB: predicated region body
PF: predicated region fallthrough
CT: control target
= control target key end

     0   :  { %10 = vsyncpa [#allocation3], 0  ;;  %s342_s0 = inlined_call_operand.hbm [shape: f32[1,512], index: 0, kind: input, shape index: {}]   ;;  %s343_s1 = inlined_call_operand.hbm [shape: f32[1,512], index: 1, kind: input, shape index: {}]   ;;  %s344_s2 = inlined_call_operand.vmem [shape: f32[1,512], index: 2, kind: input, shape index: {}]   ;;  %s345_s3 = inlined_call_operand.hbm [shape: f32[8,512], index: 3, kind: output, shape index: {0}]   ;;  %s346_s4 = inlined_call_operand.hbm [shape: f32[8,512], index: 4, kind: output, shape index: {1}]  }
   0x1   :  { %11 = vsyncpa [#allocation6], 0 }
   0x2   :  { %12 = vsyncpa [#allocation4], 0 }
   0x3   :  { %13 = vsyncpa [#allocation9], 0  ;;  %s261_s15 = smov [#allocation2]   ;;  %s262_s17 = smov [#allocation5]  }
   0x4   :  { %s26_s16 = sshll.u32 %s261_s15, 4  ;;  %s42_s18 = sshll.u32 %s262_s17, 4  ;;  %s27_s16 = int_to_ptr.vmem [resolvable:$true] %s26_s16  ;;  %s43_s18 = int_to_ptr.vmem [resolvable:$true] %s42_s18 }
   0x5   :  { %s165_s21 = scalar_lea.hbm %s342_s0, 64 }
   0x6   :  { %p166_p0 = scmp.ne.s32.totalorder %s342_s0, %s165_s21  ;;  %p169_p1 = scmp.lt.u32.totalorder %s165_s21, %s342_s0 }
   0x8   :  { %p171_p2 = pnand %p169_p1, %p166_p0 }
   0xa   :  { %174 = shalt.err (!%p171_p2)
}
   0xb   :  { %s175_s26 = scalar_lea.vmem %s27_s16, 64  ;;  %p180_p4 = scmp.lt.s32.totalorder %s27_s16, %s27_s16 }
   0xc   :  { %p176_p3 = scmp.ne.s32.totalorder %s27_s16, %s175_s26  ;;  %p181_p5 = scmp.lt.s32.totalorder %s175_s26, %s175_s26 }
   0xe   :  { %p182_p6 = por %p181_p5, %p180_p4 }
  0x10   :  { %p183_p7 = pnand %p182_p6, %p176_p3 }
  0x12   :  { %186 = shalt.err (!%p183_p7)
}
  0x13   :  { %29 = dma.hbm_to_vmem [thread:$0]  %s342_s0, 64, %s27_s16, [#allocation3]  }
  0x14   :  { %s187_s5 = scalar_lea.hbm %s343_s1, 64 }
  0x15   :  { %p188_p8 = scmp.ne.s32.totalorder %s343_s1, %s187_s5  ;;  %p191_p9 = scmp.lt.u32.totalorder %s187_s5, %s343_s1 }
  0x17   :  { %p193_p10 = pnand %p191_p9, %p188_p8 }
  0x19   :  { %196 = shalt.err (!%p193_p10)
}
  0x1a   :  { %s197_s10 = scalar_lea.vmem %s43_s18, 64  ;;  %p202_p12 = scmp.lt.s32.totalorder %s43_s18, %s43_s18 }
  0x1b   :  { %p198_p11 = scmp.ne.s32.totalorder %s43_s18, %s197_s10  ;;  %p203_p13 = scmp.lt.s32.totalorder %s197_s10, %s197_s10 }
  0x1d   :  { %p204_p0 = por %p203_p13, %p202_p12 }
  0x1f   :  { %p205_p1 = pnand %p204_p0, %p198_p11 }
  0x21   :  { %208 = shalt.err (!%p205_p1)
}
  0x22   :  { %45 = dma.hbm_to_vmem [thread:$0]  %s343_s1, 64, %s43_s18, [#allocation6]  }
  0x23   :  { %253 = dma.done.wait [#allocation3], 64  }
  0x24   :  { %254 = vsyncadd [#allocation3], 4294967232 }
  0x25   :  { %255 = dma.done.wait [#allocation6], 64  }
  0x26   :  { %256 = vsyncadd [#allocation6], 4294967232  ;;  %v263_v0 = vmov 0.0   ;;  %v99_v1 = vld [vmem:[#allocation2] sm:$0xf]  ;;  %v109_v4 = vlaneseq  ;;  %s264_s1 = smov [#allocation7]  }
  0x27   :  { %91 = vst [vmem:[#allocation7] sm:$0xff] %v263_v0  ;;  %92 = vst [vmem:[#allocation7 + $0x8] sm:$0xff] %v263_v0  ;;  %v100_v2 = vld [vmem:[#allocation5] sm:$0xf]  ;;  %v101_v3 = vld [vmem:[%s344_s2] sm:$0xf] }
  0x28   :  { %93 = vst [vmem:[#allocation7 + $0x10] sm:$0xff] %v263_v0  ;;  %94 = vst [vmem:[#allocation7 + $0x18] sm:$0xff] %v263_v0  ;;  %v102_v5 = vmul.f32 %v100_v2, %v99_v1  ;;  %v104_v6 = vadd.f32 %v100_v2, %v99_v1  ;;  %s126_s14 = sshll.u32 %s264_s1, 4  ;;  %s265_s15 = smov [#allocation8]   ;;  %vm111_vm0 = vcmp.lt.s32.totalorder %v109_v4, 512  ;;  %s127_s14 = int_to_ptr.vmem [resolvable:$true] %s126_s14 }
  0x29   :  { %95 = vst [vmem:[#allocation8] sm:$0xff] %v263_v0  ;;  %96 = vst [vmem:[#allocation8 + $0x8] sm:$0xff] %v263_v0  ;;  %s136_s16 = sshll.u32 %s265_s15, 4  ;;  %s209_s17 = scalar_lea.vmem %s127_s14, 512  ;;  %s137_s16 = int_to_ptr.vmem [resolvable:$true] %s136_s16 }
  0x2a   :  { %97 = vst [vmem:[#allocation8 + $0x10] sm:$0xff] %v263_v0  ;;  %98 = vst [vmem:[#allocation8 + $0x18] sm:$0xff] %v263_v0  ;;  %v103_v9 = vmul.f32 %v102_v5, %v101_v3  ;;  %v105_v10 = vmul.f32 %v104_v6, %v101_v3  ;;  %p210_p2 = scmp.ne.s32.totalorder %s127_s14, %s209_s17  ;;  %p214_p3 = scmp.lt.s32.totalorder %s127_s14, %s127_s14 }
  0x2b   :  { %p215_p4 = scmp.lt.s32.totalorder %s209_s17, %s209_s17 }
  0x2d   :  { %p216_p5 = por %p215_p4, %p214_p3 }
  0x2f   :  { %v106_v7 = vld [vmem:[#allocation7] ss:$8 sm:$0xf]  ;;  %p217_p6 = pnand %p216_p5, %p210_p2 }
  0x30   :  { %v108_v11 = vadd.f32 %v106_v7, %v103_v9 }
  0x31   :  { %v115_v8 = vld [vmem:[#allocation8] ss:$8 sm:$0xf] }
  0x32   :  { %v117_v12 = vadd.f32 %v115_v8, %v105_v10  ;;  %113 = vst.msk [vmem:[#allocation7] ss:$8 sm:$0xf] %vm111_vm0, %v108_v11 }
  0x34   :  { %118 = vst.msk [vmem:[#allocation8] ss:$8 sm:$0xf] %vm111_vm0, %v117_v12 }
  0x35   :  { %220 = shalt.err (!%p217_p6)
}
  0x36   :  { %s221_s19 = scalar_lea.hbm %s345_s3, 512 }
  0x37   :  { %p222_p7 = scmp.ne.s32.totalorder %s345_s3, %s221_s19  ;;  %p225_p8 = scmp.lt.u32.totalorder %s221_s19, %s345_s3 }
  0x39   :  { %p227_p9 = pnand %p225_p8, %p222_p7 }
  0x3b   :  { %230 = shalt.err (!%p227_p9)
}
  0x3c   :  { %129 = dma.vmem_to_hbm [thread:$0]  %s127_s14, 512, %s345_s3, [#allocation4]  }
  0x3d   :  { %s231_s26 = scalar_lea.vmem %s137_s16, 512  ;;  %p236_p11 = scmp.lt.s32.totalorder %s137_s16, %s137_s16 }
  0x3e   :  { %p232_p10 = scmp.ne.s32.totalorder %s137_s16, %s231_s26  ;;  %p237_p12 = scmp.lt.s32.totalorder %s231_s26, %s231_s26 }
  0x40   :  { %p238_p13 = por %p237_p12, %p236_p11 }
  0x42   :  { %p239_p0 = pnand %p238_p13, %p232_p10 }
  0x44   :  { %242 = shalt.err (!%p239_p0)
}
  0x45   :  { %s243_s29 = scalar_lea.hbm %s346_s4, 512 }
  0x46   :  { %p244_p1 = scmp.ne.s32.totalorder %s346_s4, %s243_s29  ;;  %p247_p2 = scmp.lt.u32.totalorder %s243_s29, %s346_s4 }
  0x48   :  { %p249_p3 = pnand %p247_p2, %p244_p1 }
  0x4a   :  { %252 = shalt.err (!%p249_p3)
}
  0x4b   :  { %139 = dma.vmem_to_hbm [thread:$0]  %s137_s16, 512, %s346_s4, [#allocation9]  }
  0x4c   :  { %257 = dma.done.wait [#allocation4], 512  }
  0x4d   :  { %258 = vsyncadd [#allocation4], 4294966784 }
  0x4e   :  { %259 = dma.done.wait [#allocation9], 512  }
  0x4f   :  { %260 = vsyncadd [#allocation9], 4294966784 }
  0x50   :  { %146 = vsyncpa [#allocation3], 1 }
  0x51   :  { %147 = vsyncpa [#allocation6], 1 }
  0x52   :  { %148 = vsyncpa [#allocation4], 1 }
  0x53   :  { %149 = vsyncpa [#allocation9], 1 }

</bundles_post_ra>
